<compile_context>
chip_gen: v7x
topology: tpu7x:2x2x1
jax: 0.10.0
libtpu: 0.0.40
codegen_flags: <defaults>
</compile_context>

<pallas_src>
import functools

import jax
import jax.numpy as jnp
from jax import lax
from jax.experimental import pallas as pl
from jax.experimental.pallas import tpu as pltpu


def crf_forward_kernel(tmax_ref, logits_ref, lens_ref, exp_trans_ref, mt_ref,
                       stop_ref, out_ref, alpha_ref, *, start_idx):
    block_t, L, block_b = logits_ref.shape
    bi = pl.program_id(0)
    tc = pl.program_id(1)
    t0 = tc * block_t

    @pl.when(tc == 0)
    def _init():
        row = lax.broadcasted_iota(jnp.int32, (L, block_b), 0)
        alpha_ref[...] = jnp.where(row == start_idx,
                                   jnp.float32(0.0), jnp.float32(-10000.0))

    tile_max = tmax_ref[bi]  # max seq len in this batch tile (SMEM scalar)

    @pl.when(t0 < tile_max)
    def _chunk():
        exp_trans = exp_trans_ref[...]                       # [L, L] f32 (stabilized)
        m_t = mt_ref[...]                                    # [L, 1]  row-max of trans
        remaining = lens_ref[...] - t0                       # [1, Bb] int32 (hoisted)

        def body(i, alpha):
            logit = logits_ref[i].astype(jnp.float32)        # [L, Bb] contiguous tile
            m_a = jnp.max(alpha, axis=0, keepdims=True)      # [1, Bb]
            p = jnp.exp(alpha - m_a)                         # [L, Bb]
            # sum_j exp(trans[i,j]-m_t[i]) * exp(alpha[j,b]-m_a[b])  ==  (E @ p)[i,b]
            s = jnp.dot(exp_trans, p, preferred_element_type=jnp.float32)
            alpha_nxt = logit + m_a + m_t + jnp.log(s)
            return jnp.where(remaining > i, alpha_nxt, alpha)

        unroll = block_t if block_t <= 16 else 8
        alpha_ref[...] = lax.fori_loop(0, block_t, body, alpha_ref[...],
                                       unroll=unroll)

    @pl.when(tc == pl.num_programs(1) - 1)
    def _finalize():
        a = alpha_ref[...] + stop_ref[...]                   # [L, Bb]
        m = jnp.max(a, axis=0, keepdims=True)                # [1, Bb]
        out_ref[...] = m + jnp.log(jnp.sum(jnp.exp(a - m), axis=0, keepdims=True))


def crf_forward(logits, lens, transitions, *, start_idx, stop_idx,
                block_b=None, block_t=None, logits_storage_dtype=jnp.bfloat16,
                vmem_limit_bytes=None):
    """logits: [B, T, L] f32; lens: [B] int; transitions: [L, L] f32 -> [B] f32."""
    B, T, L = logits.shape

    if block_b is None:
        # lane-dense batch tiles; keep >=2 tiles on mid-size B (v7x has 2 TCs)
        block_b = 256 if B > 512 else 128
    if block_t is None:
        block_t = T if T <= 256 else 256

    num_b = pl.cdiv(B, block_b)
    num_t = pl.cdiv(T, block_t)
    B_pad = num_b * block_b
    T_pad = num_t * block_t

    # --- hoisted transition precompute (stabilized exp for the MXU reduction) ---
    trans = transitions.astype(jnp.float32)
    m_t = jnp.max(trans, axis=1, keepdims=True)              # [L, 1]
    exp_trans = jnp.exp(trans - m_t)                         # [L, L], entries <= 1
    stop_row = trans[stop_idx].reshape(L, 1)                 # [L, 1]

    # --- batch-minor logits layout: [T, L, B], optional bf16 HBM storage ---
    store_dtype = jnp.float32 if logits_storage_dtype is None else logits_storage_dtype
    logits_tlb = jnp.transpose(logits.astype(store_dtype), (1, 2, 0))
    logits_tlb = jnp.pad(logits_tlb, ((0, T_pad - T), (0, 0), (0, B_pad - B)))

    lens1d = jnp.pad(lens.astype(jnp.int32), (0, B_pad - B))  # padded rows: len 0
    lens2d = lens1d.reshape(1, B_pad)                          # lane-dense lens
    tile_max = jnp.max(lens1d.reshape(num_b, block_b), axis=1).astype(jnp.int32)

    if vmem_limit_bytes is None:
        blk_bytes = block_t * max(16, L) * block_b * jnp.dtype(store_dtype).itemsize
        vmem_limit_bytes = int(min(64 << 20, max(32 << 20, 4 * blk_bytes + (8 << 20))))

    kernel = functools.partial(crf_forward_kernel, start_idx=start_idx)

    out = pl.pallas_call(
        kernel,
        out_shape=jax.ShapeDtypeStruct((1, B_pad), jnp.float32),
        grid_spec=pltpu.PrefetchScalarGridSpec(
            num_scalar_prefetch=1,
            grid=(num_b, num_t),
            in_specs=[
                pl.BlockSpec((block_t, L, block_b), lambda b, t, tm: (t, 0, b)),
                pl.BlockSpec((1, block_b), lambda b, t, tm: (0, b)),
                pl.BlockSpec((L, L), lambda b, t, tm: (0, 0)),
                pl.BlockSpec((L, 1), lambda b, t, tm: (0, 0)),
                pl.BlockSpec((L, 1), lambda b, t, tm: (0, 0)),
            ],
            out_specs=pl.BlockSpec((1, block_b), lambda b, t, tm: (0, b)),
            scratch_shapes=[pltpu.VMEM((L, block_b), jnp.float32)],
        ),
        compiler_params=pltpu.CompilerParams(
            dimension_semantics=("parallel", "arbitrary"),
            vmem_limit_bytes=vmem_limit_bytes,
        ),
    )(tile_max, logits_tlb, lens2d, exp_trans, m_t, stop_row)
    return out[0, :B]


def crf_forward_ref(logits, lens, transitions, *, start_idx, stop_idx):
    """Pure-JAX replica of the PyTorch forward (for validation)."""
    B, T, L = logits.shape
    alpha = jnp.full((B, L), -10000.0, jnp.float32).at[:, start_idx].set(0.0)
    c_lens = lens.astype(jnp.int32)
    for t in range(T):
        logit = logits[:, t, :]
        mat = transitions[None, :, :] + alpha[:, None, :] + logit[:, :, None]
        m = jnp.max(mat, axis=2)
        alpha_nxt = m + jnp.log(jnp.sum(jnp.exp(mat - m[:, :, None]), axis=2))
        mask = (c_lens > 0).astype(jnp.float32)[:, None]
        alpha = mask * alpha_nxt + (1.0 - mask) * alpha
        c_lens = c_lens - 1
    alpha = alpha + transitions[stop_idx][None, :]
    m = jnp.max(alpha, axis=1)
    return m + jnp.log(jnp.sum(jnp.exp(alpha - m[:, None]), axis=1))


if __name__ == "__main__":
    # Small shapes consistent with CRF.forward: batch=4, seq=8, vocab=10 -> 12 labels.
    B, T, vocab_size = 4, 8, 10
    n_labels = vocab_size + 2
    start_idx = n_labels - 2
    stop_idx = n_labels - 1

    key = jax.random.PRNGKey(0)
    k_logits, k_trans = jax.random.split(key)
    logits = jax.random.normal(k_logits, (B, T, n_labels), dtype=jnp.float32)
    transitions = jax.random.normal(k_trans, (n_labels, n_labels), dtype=jnp.float32)
    lens = jnp.array([8, 5, 3, 1], dtype=jnp.int32)

    norm_ref = crf_forward_ref(logits, lens, transitions,
                               start_idx=start_idx, stop_idx=stop_idx)

    # exact path (f32 HBM storage)
    norm = crf_forward(logits, lens, transitions, start_idx=start_idx,
                       stop_idx=stop_idx, logits_storage_dtype=None)
    norm = jax.block_until_ready(norm)
    assert norm.shape == (B,)
    assert jnp.allclose(norm, norm_ref, rtol=1e-4, atol=1e-4), (norm, norm_ref)

    # default bf16-storage path (bandwidth optimization; compute stays f32)
    norm_bf16 = jax.block_until_ready(
        crf_forward(logits, lens, transitions, start_idx=start_idx, stop_idx=stop_idx))
    assert jnp.allclose(norm_bf16, norm_ref, rtol=3e-2, atol=3e-2), (norm_bf16, norm_ref)

    # ragged multi-chunk coverage (exercises dead-time-chunk skipping)
    B2, T2 = 6, 40
    k1, _ = jax.random.split(jax.random.PRNGKey(1))
    logits2 = jax.random.normal(k1, (B2, T2, n_labels), dtype=jnp.float32)
    lens2 = jnp.array([25, 17, 20, 3, 9, 1], dtype=jnp.int32)
    ref2 = crf_forward_ref(logits2, lens2, transitions,
                           start_idx=start_idx, stop_idx=stop_idx)
    norm2 = jax.block_until_ready(
        crf_forward(logits2, lens2, transitions, start_idx=start_idx,
                    stop_idx=stop_idx, block_t=16, logits_storage_dtype=None))
    assert jnp.allclose(norm2, ref2, rtol=1e-4, atol=1e-4), (norm2, ref2)

    # TODO(synk): viterbi_decode / transition_score are not part of forward(); not ported.
    print("KERNEL_OK")
</pallas_src>

<mosaic_0001>
module attributes {stable_mosaic.version = 11 : i64} {
  func.func @crf_forward_kernel(%arg0: i32, %arg1: i32, %arg2: memref<1xi32, #tpu.memory_space<smem>>, %arg3: memref<8x12x128xf32, #tpu.memory_space<vmem>>, %arg4: memref<1x128xi32, #tpu.memory_space<vmem>>, %arg5: memref<12x12xf32, #tpu.memory_space<vmem>>, %arg6: memref<12x1xf32, #tpu.memory_space<vmem>>, %arg7: memref<12x1xf32, #tpu.memory_space<vmem>>, %arg8: memref<1x128xf32, #tpu.memory_space<vmem>>, %arg9: memref<12x128xf32, #tpu.memory_space<vmem>>) attributes {dimension_semantics = [#tpu.dimension_semantics<parallel>, #tpu.dimension_semantics<arbitrary>], iteration_bounds = array<i64: 1, 1>, scalar_prefetch = 1 : i64, scratch_operands = 1 : i64, tpu.core_type = #tpu.core_type<tc>, window_params = [{transform_indices = @transform_0, window_bounds = array<i64: 8, 12, 128>}, {transform_indices = @transform_1, window_bounds = array<i64: 1, 128>}, {pipeline_mode = #tpu.pipeline_mode<synchronous>, transform_indices = @transform_2, window_bounds = array<i64: 12, 12>}, {pipeline_mode = #tpu.pipeline_mode<synchronous>, transform_indices = @transform_3, window_bounds = array<i64: 12, 1>}, {pipeline_mode = #tpu.pipeline_mode<synchronous>, transform_indices = @transform_4, window_bounds = array<i64: 12, 1>}, {transform_indices = @transform_5, window_bounds = array<i64: 1, 128>}]} {
    %c8_i32 = arith.constant 8 : i32
    %0 = arith.muli %arg1, %c8_i32 : i32
    %c0_i32 = arith.constant 0 : i32
    %1 = arith.cmpi eq, %arg1, %c0_i32 : i32
    %2 = arith.extui %1 : i1 to i32
    %c0_i32_0 = arith.constant 0 : i32
    %3 = arith.cmpi ne, %2, %c0_i32_0 : i32
    scf.if %3 {
      %12 = tpu.iota {dimensions = array<i32: 0>} : vector<12x128xi32>
      %c10_i32 = arith.constant 10 : i32
      %13 = vector.broadcast %c10_i32 : i32 to vector<12x128xi32>
      %14 = arith.cmpi eq, %12, %13 : vector<12x128xi32>
      %cst = arith.constant 0.000000e+00 : f32
      %cst_4 = arith.constant -1.000000e+04 : f32
      %15 = vector.broadcast %cst : f32 to vector<12x128xf32>
      %16 = vector.broadcast %cst_4 : f32 to vector<12x128xf32>
      %17 = arith.select %14, %15, %16 : vector<12x128xi1>, vector<12x128xf32>
      %c0 = arith.constant 0 : index
      %c0_5 = arith.constant 0 : index
      %18 = vector.load %arg9[%c0, %c0_5] : memref<12x128xf32, #tpu.memory_space<vmem>>, vector<12x128xf32>
      tpu.vector_store %arg9[%c0, %c0_5], %17 {strides = array<i32>} : memref<12x128xf32, #tpu.memory_space<vmem>>, vector<12x128xf32>,
    } else {
    }
    %4 = arith.index_cast %arg0 : i32 to index
    %5 = memref.load %arg2[%4] : memref<1xi32, #tpu.memory_space<smem>>
    %6 = arith.cmpi slt, %0, %5 : i32
    %7 = arith.extui %6 : i1 to i32
    %c0_i32_1 = arith.constant 0 : i32
    %8 = arith.cmpi ne, %7, %c0_i32_1 : i32
    scf.if %8 {
      %c0 = arith.constant 0 : index
      %c0_4 = arith.constant 0 : index
      %12 = vector.load %arg5[%c0, %c0_4] : memref<12x12xf32, #tpu.memory_space<vmem>>, vector<12x12xf32>
      %c0_5 = arith.constant 0 : index
      %c0_6 = arith.constant 0 : index
      %13 = vector.load %arg6[%c0_5, %c0_6] : memref<12x1xf32, #tpu.memory_space<vmem>>, vector<12x1xf32>
      %c0_7 = arith.constant 0 : index
      %c0_8 = arith.constant 0 : index
      %14 = vector.load %arg4[%c0_7, %c0_8] : memref<1x128xi32, #tpu.memory_space<vmem>>, vector<1x128xi32>
      %15 = vector.broadcast %0 : i32 to vector<1x128xi32>
      %16 = arith.subi %14, %15 : vector<1x128xi32>
      %c0_9 = arith.constant 0 : index
      %c0_10 = arith.constant 0 : index
      %17 = vector.load %arg9[%c0_9, %c0_10] : memref<12x128xf32, #tpu.memory_space<vmem>>, vector<12x128xf32>
      %c0_i32_11 = arith.constant 0 : i32
      %18 = arith.index_cast %c0_i32_11 : i32 to index
      %c0_12 = arith.constant 0 : index
      %c0_13 = arith.constant 0 : index
      %19 = vector.load %arg3[%18, %c0_12, %c0_13] : memref<8x12x128xf32, #tpu.memory_space<vmem>>, vector<1x12x128xf32>
      %20 = vector.shape_cast %19 : vector<1x12x128xf32> to vector<12x128xf32>
      %cst = arith.constant dense<0xFF800000> : vector<128xf32>
      %21 = vector.multi_reduction <maximumf>, %17, %cst [0] : vector<12x128xf32> to vector<128xf32>
      %22 = vector.shape_cast %21 : vector<128xf32> to vector<1x128xf32>
      %23 = vector.broadcast %22 : vector<1x128xf32> to vector<12x128xf32>
      %24 = arith.subf %17, %23 : vector<12x128xf32>
      %25 = math.exp %24 : vector<12x128xf32>
      %cst_14 = arith.constant dense<0.000000e+00> : vector<12x128xf32>
      %26 = tpu.matmul %12, %25, %cst_14 {dimension_numbers = #tpu.dot_dimension_numbers<[1], [0], [0], [1], [0, 0, 1, 1], [], []>} : vector<12x12xf32>, vector<12x128xf32>, vector<12x128xf32> -> vector<12x128xf32>
      %27 = vector.broadcast %22 : vector<1x128xf32> to vector<12x128xf32>
      %28 = arith.addf %20, %27 : vector<12x128xf32>
      %29 = vector.broadcast %13 : vector<12x1xf32> to vector<12x128xf32>
      %30 = arith.addf %28, %29 : vector<12x128xf32>
      %31 = math.log %26 : vector<12x128xf32>
      %32 = arith.addf %30, %31 : vector<12x128xf32>
      %33 = vector.broadcast %c0_i32_11 : i32 to vector<1x128xi32>
      %34 = arith.cmpi sgt, %16, %33 : vector<1x128xi32>
      %35 = vector.shape_cast %34 : vector<1x128xi1> to vector<1x128xi1>
      %36 = vector.broadcast %35 : vector<1x128xi1> to vector<12x128xi1>
      %37 = arith.select %36, %32, %17 : vector<12x128xi1>, vector<12x128xf32>
      %c1_i32 = arith.constant 1 : i32
      %38 = arith.index_cast %c1_i32 : i32 to index
      %c0_15 = arith.constant 0 : index
      %c0_16 = arith.constant 0 : index
      %39 = vector.load %arg3[%38, %c0_15, %c0_16] : memref<8x12x128xf32, #tpu.memory_space<vmem>>, vector<1x12x128xf32>
      %40 = vector.shape_cast %39 : vector<1x12x128xf32> to vector<12x128xf32>
      %cst_17 = arith.constant dense<0xFF800000> : vector<128xf32>
      %41 = vector.multi_reduction <maximumf>, %37, %cst_17 [0] : vector<12x128xf32> to vector<128xf32>
      %42 = vector.shape_cast %41 : vector<128xf32> to vector<1x128xf32>
      %43 = vector.broadcast %42 : vector<1x128xf32> to vector<12x128xf32>
      %44 = arith.subf %37, %43 : vector<12x128xf32>
      %45 = math.exp %44 : vector<12x128xf32>
      %cst_18 = arith.constant dense<0.000000e+00> : vector<12x128xf32>
      %46 = tpu.matmul %12, %45, %cst_18 {dimension_numbers = #tpu.dot_dimension_numbers<[1], [0], [0], [1], [0, 0, 1, 1], [], []>} : vector<12x12xf32>, vector<12x128xf32>, vector<12x128xf32> -> vector<12x128xf32>
      %47 = vector.broadcast %42 : vector<1x128xf32> to vector<12x128xf32>
      %48 = arith.addf %40, %47 : vector<12x128xf32>
      %49 = vector.broadcast %13 : vector<12x1xf32> to vector<12x128xf32>
      %50 = arith.addf %48, %49 : vector<12x128xf32>
      %51 = math.log %46 : vector<12x128xf32>
      %52 = arith.addf %50, %51 : vector<12x128xf32>
      %53 = vector.broadcast %c1_i32 : i32 to vector<1x128xi32>
      %54 = arith.cmpi sgt, %16, %53 : vector<1x128xi32>
      %55 = vector.shape_cast %54 : vector<1x128xi1> to vector<1x128xi1>
      %56 = vector.broadcast %55 : vector<1x128xi1> to vector<12x128xi1>
      %57 = arith.select %56, %52, %37 : vector<12x128xi1>, vector<12x128xf32>
      %c2_i32 = arith.constant 2 : i32
      %58 = arith.index_cast %c2_i32 : i32 to index
      %c0_19 = arith.constant 0 : index
      %c0_20 = arith.constant 0 : index
      %59 = vector.load %arg3[%58, %c0_19, %c0_20] : memref<8x12x128xf32, #tpu.memory_space<vmem>>, vector<1x12x128xf32>
      %60 = vector.shape_cast %59 : vector<1x12x128xf32> to vector<12x128xf32>
      %cst_21 = arith.constant dense<0xFF800000> : vector<128xf32>
      %61 = vector.multi_reduction <maximumf>, %57, %cst_21 [0] : vector<12x128xf32> to vector<128xf32>
      %62 = vector.shape_cast %61 : vector<128xf32> to vector<1x128xf32>
      %63 = vector.broadcast %62 : vector<1x128xf32> to vector<12x128xf32>
      %64 = arith.subf %57, %63 : vector<12x128xf32>
      %65 = math.exp %64 : vector<12x128xf32>
      %cst_22 = arith.constant dense<0.000000e+00> : vector<12x128xf32>
      %66 = tpu.matmul %12, %65, %cst_22 {dimension_numbers = #tpu.dot_dimension_numbers<[1], [0], [0], [1], [0, 0, 1, 1], [], []>} : vector<12x12xf32>, vector<12x128xf32>, vector<12x128xf32> -> vector<12x128xf32>
      %67 = vector.broadcast %62 : vector<1x128xf32> to vector<12x128xf32>
      %68 = arith.addf %60, %67 : vector<12x128xf32>
      %69 = vector.broadcast %13 : vector<12x1xf32> to vector<12x128xf32>
      %70 = arith.addf %68, %69 : vector<12x128xf32>
      %71 = math.log %66 : vector<12x128xf32>
      %72 = arith.addf %70, %71 : vector<12x128xf32>
      %73 = vector.broadcast %c2_i32 : i32 to vector<1x128xi32>
      %74 = arith.cmpi sgt, %16, %73 : vector<1x128xi32>
      %75 = vector.shape_cast %74 : vector<1x128xi1> to vector<1x128xi1>
      %76 = vector.broadcast %75 : vector<1x128xi1> to vector<12x128xi1>
      %77 = arith.select %76, %72, %57 : vector<12x128xi1>, vector<12x128xf32>
      %c3_i32 = arith.constant 3 : i32
      %78 = arith.index_cast %c3_i32 : i32 to index
      %c0_23 = arith.constant 0 : index
      %c0_24 = arith.constant 0 : index
      %79 = vector.load %arg3[%78, %c0_23, %c0_24] : memref<8x12x128xf32, #tpu.memory_space<vmem>>, vector<1x12x128xf32>
      %80 = vector.shape_cast %79 : vector<1x12x128xf32> to vector<12x128xf32>
      %cst_25 = arith.constant dense<0xFF800000> : vector<128xf32>
      %81 = vector.multi_reduction <maximumf>, %77, %cst_25 [0] : vector<12x128xf32> to vector<128xf32>
      %82 = vector.shape_cast %81 : vector<128xf32> to vector<1x128xf32>
      %83 = vector.broadcast %82 : vector<1x128xf32> to vector<12x128xf32>
      %84 = arith.subf %77, %83 : vector<12x128xf32>
      %85 = math.exp %84 : vector<12x128xf32>
      %cst_26 = arith.constant dense<0.000000e+00> : vector<12x128xf32>
      %86 = tpu.matmul %12, %85, %cst_26 {dimension_numbers = #tpu.dot_dimension_numbers<[1], [0], [0], [1], [0, 0, 1, 1], [], []>} : vector<12x12xf32>, vector<12x128xf32>, vector<12x128xf32> -> vector<12x128xf32>
      %87 = vector.broadcast %82 : vector<1x128xf32> to vector<12x128xf32>
      %88 = arith.addf %80, %87 : vector<12x128xf32>
      %89 = vector.broadcast %13 : vector<12x1xf32> to vector<12x128xf32>
      %90 = arith.addf %88, %89 : vector<12x128xf32>
      %91 = math.log %86 : vector<12x128xf32>
      %92 = arith.addf %90, %91 : vector<12x128xf32>
      %93 = vector.broadcast %c3_i32 : i32 to vector<1x128xi32>
      %94 = arith.cmpi sgt, %16, %93 : vector<1x128xi32>
      %95 = vector.shape_cast %94 : vector<1x128xi1> to vector<1x128xi1>
      %96 = vector.broadcast %95 : vector<1x128xi1> to vector<12x128xi1>
      %97 = arith.select %96, %92, %77 : vector<12x128xi1>, vector<12x128xf32>
      %c4_i32 = arith.constant 4 : i32
      %98 = arith.index_cast %c4_i32 : i32 to index
      %c0_27 = arith.constant 0 : index
      %c0_28 = arith.constant 0 : index
      %99 = vector.load %arg3[%98, %c0_27, %c0_28] : memref<8x12x128xf32, #tpu.memory_space<vmem>>, vector<1x12x128xf32>
      %100 = vector.shape_cast %99 : vector<1x12x128xf32> to vector<12x128xf32>
      %cst_29 = arith.constant dense<0xFF800000> : vector<128xf32>
      %101 = vector.multi_reduction <maximumf>, %97, %cst_29 [0] : vector<12x128xf32> to vector<128xf32>
      %102 = vector.shape_cast %101 : vector<128xf32> to vector<1x128xf32>
      %103 = vector.broadcast %102 : vector<1x128xf32> to vector<12x128xf32>
      %104 = arith.subf %97, %103 : vector<12x128xf32>
      %105 = math.exp %104 : vector<12x128xf32>
      %cst_30 = arith.constant dense<0.000000e+00> : vector<12x128xf32>
      %106 = tpu.matmul %12, %105, %cst_30 {dimension_numbers = #tpu.dot_dimension_numbers<[1], [0], [0], [1], [0, 0, 1, 1], [], []>} : vector<12x12xf32>, vector<12x128xf32>, vector<12x128xf32> -> vector<12x128xf32>
      %107 = vector.broadcast %102 : vector<1x128xf32> to vector<12x128xf32>
      %108 = arith.addf %100, %107 : vector<12x128xf32>
      %109 = vector.broadcast %13 : vector<12x1xf32> to vector<12x128xf32>
      %110 = arith.addf %108, %109 : vector<12x128xf32>
      %111 = math.log %106 : vector<12x128xf32>
      %112 = arith.addf %110, %111 : vector<12x128xf32>
      %113 = vector.broadcast %c4_i32 : i32 to vector<1x128xi32>
      %114 = arith.cmpi sgt, %16, %113 : vector<1x128xi32>
      %115 = vector.shape_cast %114 : vector<1x128xi1> to vector<1x128xi1>
      %116 = vector.broadcast %115 : vector<1x128xi1> to vector<12x128xi1>
      %117 = arith.select %116, %112, %97 : vector<12x128xi1>, vector<12x128xf32>
      %c5_i32 = arith.constant 5 : i32
      %118 = arith.index_cast %c5_i32 : i32 to index
      %c0_31 = arith.constant 0 : index
      %c0_32 = arith.constant 0 : index
      %119 = vector.load %arg3[%118, %c0_31, %c0_32] : memref<8x12x128xf32, #tpu.memory_space<vmem>>, vector<1x12x128xf32>
      %120 = vector.shape_cast %119 : vector<1x12x128xf32> to vector<12x128xf32>
      %cst_33 = arith.constant dense<0xFF800000> : vector<128xf32>
      %121 = vector.multi_reduction <maximumf>, %117, %cst_33 [0] : vector<12x128xf32> to vector<128xf32>
      %122 = vector.shape_cast %121 : vector<128xf32> to vector<1x128xf32>
      %123 = vector.broadcast %122 : vector<1x128xf32> to vector<12x128xf32>
      %124 = arith.subf %117, %123 : vector<12x128xf32>
      %125 = math.exp %124 : vector<12x128xf32>
      %cst_34 = arith.constant dense<0.000000e+00> : vector<12x128xf32>
      %126 = tpu.matmul %12, %125, %cst_34 {dimension_numbers = #tpu.dot_dimension_numbers<[1], [0], [0], [1], [0, 0, 1, 1], [], []>} : vector<12x12xf32>, vector<12x128xf32>, vector<12x128xf32> -> vector<12x128xf32>
      %127 = vector.broadcast %122 : vector<1x128xf32> to vector<12x128xf32>
      %128 = arith.addf %120, %127 : vector<12x128xf32>
      %129 = vector.broadcast %13 : vector<12x1xf32> to vector<12x128xf32>
      %130 = arith.addf %128, %129 : vector<12x128xf32>
      %131 = math.log %126 : vector<12x128xf32>
      %132 = arith.addf %130, %131 : vector<12x128xf32>
      %133 = vector.broadcast %c5_i32 : i32 to vector<1x128xi32>
      %134 = arith.cmpi sgt, %16, %133 : vector<1x128xi32>
      %135 = vector.shape_cast %134 : vector<1x128xi1> to vector<1x128xi1>
      %136 = vector.broadcast %135 : vector<1x128xi1> to vector<12x128xi1>
      %137 = arith.select %136, %132, %117 : vector<12x128xi1>, vector<12x128xf32>
      %c6_i32 = arith.constant 6 : i32
      %138 = arith.index_cast %c6_i32 : i32 to index
      %c0_35 = arith.constant 0 : index
      %c0_36 = arith.constant 0 : index
      %139 = vector.load %arg3[%138, %c0_35, %c0_36] : memref<8x12x128xf32, #tpu.memory_space<vmem>>, vector<1x12x128xf32>
      %140 = vector.shape_cast %139 : vector<1x12x128xf32> to vector<12x128xf32>
      %cst_37 = arith.constant dense<0xFF800000> : vector<128xf32>
      %141 = vector.multi_reduction <maximumf>, %137, %cst_37 [0] : vector<12x128xf32> to vector<128xf32>
      %142 = vector.shape_cast %141 : vector<128xf32> to vector<1x128xf32>
      %143 = vector.broadcast %142 : vector<1x128xf32> to vector<12x128xf32>
      %144 = arith.subf %137, %143 : vector<12x128xf32>
      %145 = math.exp %144 : vector<12x128xf32>
      %cst_38 = arith.constant dense<0.000000e+00> : vector<12x128xf32>
      %146 = tpu.matmul %12, %145, %cst_38 {dimension_numbers = #tpu.dot_dimension_numbers<[1], [0], [0], [1], [0, 0, 1, 1], [], []>} : vector<12x12xf32>, vector<12x128xf32>, vector<12x128xf32> -> vector<12x128xf32>
      %147 = vector.broadcast %142 : vector<1x128xf32> to vector<12x128xf32>
      %148 = arith.addf %140, %147 : vector<12x128xf32>
      %149 = vector.broadcast %13 : vector<12x1xf32> to vector<12x128xf32>
      %150 = arith.addf %148, %149 : vector<12x128xf32>
      %151 = math.log %146 : vector<12x128xf32>
      %152 = arith.addf %150, %151 : vector<12x128xf32>
      %153 = vector.broadcast %c6_i32 : i32 to vector<1x128xi32>
      %154 = arith.cmpi sgt, %16, %153 : vector<1x128xi32>
      %155 = vector.shape_cast %154 : vector<1x128xi1> to vector<1x128xi1>
      %156 = vector.broadcast %155 : vector<1x128xi1> to vector<12x128xi1>
      %157 = arith.select %156, %152, %137 : vector<12x128xi1>, vector<12x128xf32>
      %c7_i32 = arith.constant 7 : i32
      %158 = arith.index_cast %c7_i32 : i32 to index
      %c0_39 = arith.constant 0 : index
      %c0_40 = arith.constant 0 : index
      %159 = vector.load %arg3[%158, %c0_39, %c0_40] : memref<8x12x128xf32, #tpu.memory_space<vmem>>, vector<1x12x128xf32>
      %160 = vector.shape_cast %159 : vector<1x12x128xf32> to vector<12x128xf32>
      %cst_41 = arith.constant dense<0xFF800000> : vector<128xf32>
      %161 = vector.multi_reduction <maximumf>, %157, %cst_41 [0] : vector<12x128xf32> to vector<128xf32>
      %162 = vector.shape_cast %161 : vector<128xf32> to vector<1x128xf32>
      %163 = vector.broadcast %162 : vector<1x128xf32> to vector<12x128xf32>
      %164 = arith.subf %157, %163 : vector<12x128xf32>
      %165 = math.exp %164 : vector<12x128xf32>
      %cst_42 = arith.constant dense<0.000000e+00> : vector<12x128xf32>
      %166 = tpu.matmul %12, %165, %cst_42 {dimension_numbers = #tpu.dot_dimension_numbers<[1], [0], [0], [1], [0, 0, 1, 1], [], []>} : vector<12x12xf32>, vector<12x128xf32>, vector<12x128xf32> -> vector<12x128xf32>
      %167 = vector.broadcast %162 : vector<1x128xf32> to vector<12x128xf32>
      %168 = arith.addf %160, %167 : vector<12x128xf32>
      %169 = vector.broadcast %13 : vector<12x1xf32> to vector<12x128xf32>
      %170 = arith.addf %168, %169 : vector<12x128xf32>
      %171 = math.log %166 : vector<12x128xf32>
      %172 = arith.addf %170, %171 : vector<12x128xf32>
      %173 = vector.broadcast %c7_i32 : i32 to vector<1x128xi32>
      %174 = arith.cmpi sgt, %16, %173 : vector<1x128xi32>
      %175 = vector.shape_cast %174 : vector<1x128xi1> to vector<1x128xi1>
      %176 = vector.broadcast %175 : vector<1x128xi1> to vector<12x128xi1>
      %177 = arith.select %176, %172, %157 : vector<12x128xi1>, vector<12x128xf32>
      %c8_i32_43 = arith.constant 8 : i32
      %c0_44 = arith.constant 0 : index
      %c0_45 = arith.constant 0 : index
      %178 = vector.load %arg9[%c0_44, %c0_45] : memref<12x128xf32, #tpu.memory_space<vmem>>, vector<12x128xf32>
      tpu.vector_store %arg9[%c0_44, %c0_45], %177 {strides = array<i32>} : memref<12x128xf32, #tpu.memory_space<vmem>>, vector<12x128xf32>,
    } else {
    }
    %c0_i32_2 = arith.constant 0 : i32
    %9 = arith.cmpi eq, %arg1, %c0_i32_2 : i32
    %10 = arith.extui %9 : i1 to i32
    %c0_i32_3 = arith.constant 0 : i32
    %11 = arith.cmpi ne, %10, %c0_i32_3 : i32
    scf.if %11 {
      %c0 = arith.constant 0 : index
      %c0_4 = arith.constant 0 : index
      %12 = vector.load %arg9[%c0, %c0_4] : memref<12x128xf32, #tpu.memory_space<vmem>>, vector<12x128xf32>
      %c0_5 = arith.constant 0 : index
      %c0_6 = arith.constant 0 : index
      %13 = vector.load %arg7[%c0_5, %c0_6] : memref<12x1xf32, #tpu.memory_space<vmem>>, vector<12x1xf32>
      %14 = vector.broadcast %13 : vector<12x1xf32> to vector<12x128xf32>
      %15 = arith.addf %12, %14 : vector<12x128xf32>
      %cst = arith.constant dense<0xFF800000> : vector<128xf32>
      %16 = vector.multi_reduction <maximumf>, %15, %cst [0] : vector<12x128xf32> to vector<128xf32>
      %17 = vector.shape_cast %16 : vector<128xf32> to vector<1x128xf32>
      %18 = vector.broadcast %17 : vector<1x128xf32> to vector<12x128xf32>
      %19 = arith.subf %15, %18 : vector<12x128xf32>
      %20 = math.exp %19 : vector<12x128xf32>
      %cst_7 = arith.constant dense<0.000000e+00> : vector<128xf32>
      %21 = vector.multi_reduction <add>, %20, %cst_7 [0] : vector<12x128xf32> to vector<128xf32>
      %22 = vector.shape_cast %21 : vector<128xf32> to vector<1x128xf32>
      %23 = math.log %22 : vector<1x128xf32>
      %24 = arith.addf %17, %23 : vector<1x128xf32>
      %c0_8 = arith.constant 0 : index
      %c0_9 = arith.constant 0 : index
      %25 = vector.load %arg8[%c0_8, %c0_9] : memref<1x128xf32, #tpu.memory_space<vmem>>, vector<1x128xf32>
      tpu.vector_store %arg8[%c0_8, %c0_9], %24 {strides = array<i32>} : memref<1x128xf32, #tpu.memory_space<vmem>>, vector<1x128xf32>,
    } else {
    }
    return
  }
  func.func @transform_0(%arg0: i32, %arg1: i32, %arg2: memref<1xi32, #tpu.memory_space<smem>>) -> (i32, i32, i32) {
    %c0_i32 = arith.constant 0 : i32
    %c0_i32_0 = arith.constant 0 : i32
    return %arg1, %c0_i32, %arg0 : i32, i32, i32
  }
  func.func @transform_1(%arg0: i32, %arg1: i32, %arg2: memref<1xi32, #tpu.memory_space<smem>>) -> (i32, i32) {
    %c0_i32 = arith.constant 0 : i32
    %c0_i32_0 = arith.constant 0 : i32
    return %c0_i32, %arg0 : i32, i32
  }
  func.func @transform_2(%arg0: i32, %arg1: i32, %arg2: memref<1xi32, #tpu.memory_space<smem>>) -> (i32, i32) {
    %c0_i32 = arith.constant 0 : i32
    %c0_i32_0 = arith.constant 0 : i32
    %c0_i32_1 = arith.constant 0 : i32
    return %c0_i32, %c0_i32_0 : i32, i32
  }
  func.func @transform_3(%arg0: i32, %arg1: i32, %arg2: memref<1xi32, #tpu.memory_space<smem>>) -> (i32, i32) {
    %c0_i32 = arith.constant 0 : i32
    %c0_i32_0 = arith.constant 0 : i32
    %c0_i32_1 = arith.constant 0 : i32
    return %c0_i32, %c0_i32_0 : i32, i32
  }
  func.func @transform_4(%arg0: i32, %arg1: i32, %arg2: memref<1xi32, #tpu.memory_space<smem>>) -> (i32, i32) {
    %c0_i32 = arith.constant 0 : i32
    %c0_i32_0 = arith.constant 0 : i32
    %c0_i32_1 = arith.constant 0 : i32
    return %c0_i32, %c0_i32_0 : i32, i32
  }
  func.func @transform_5(%arg0: i32, %arg1: i32, %arg2: memref<1xi32, #tpu.memory_space<smem>>) -> (i32, i32) {
    %c0_i32 = arith.constant 0 : i32
    %c0_i32_0 = arith.constant 0 : i32
    return %c0_i32, %arg0 : i32, i32
  }
}

</mosaic_0001>

<bundles_post_ra>
// kernel: tpu_custom_call.1
= control target key start
LH: loop header
LB: loop body
LE: loop exit
PB: predicated region body
PF: predicated region fallthrough
CT: control target
= control target key end

     0   :  { %12 = vsyncpa [#allocation6], 0  ;;  %v28_v0 = vlaneseq  ;;  %v1319_v1 = vmov -10000.0   ;;  %s1580_s0 = inlined_call_operand.<no memory space> [shape: s32[1], index: 0, kind: input, shape index: {}]   ;;  %s1581_s1 = inlined_call_operand.vmem [shape: f32[8,12,128], index: 1, kind: input, shape index: {}]   ;;  %s1582_s2 = inlined_call_operand.vmem [shape: s32[1,128], index: 2, kind: input, shape index: {}]   ;;  %s1583_s3 = inlined_call_operand.vmem [shape: f32[12,12], index: 3, kind: input, shape index: {}]   ;;  %s1584_s4 = inlined_call_operand.vmem [shape: f32[12,1], index: 4, kind: input, shape index: {}]   ;;  %s1585_s5 = inlined_call_operand.vmem [shape: f32[12,1], index: 5, kind: input, shape index: {}]   ;;  %s1586_s6 = inlined_call_operand.hbm [shape: f32[1,128], index: 6, kind: output, shape index: {}]  }
   0x1   :  { %35 = vst [vmem:[#allocation2] sm:$0xff] %v1319_v1  ;;  %p1043_p0 = scmp.le.s32.totalorder %s1580_s0, 0 }
   0x2   :  { %v29_v2 = vshrl.u32 %v28_v0, 7  ;;  %vm53_vm1 = vcmask (!%p1043_p0), 1043456   ;;  %v1367_v7 = vld [vmem:[%s1583_s3] sm:$0xff] (!%p1043_p0)  ;;  %vm68_vm2 = vcmask (!%p1043_p0), 97280   ;;  %v1320_v10 = vmov (!%p1043_p0), 0   ;;  %v1077_v25 = vld [vmem:[%s1581_s1 + $0x70] sm:$0xff] (!%p1043_p0) }
   0x3   :  { %41 = sbr.rel (%p1043_p0) target bundleno = 2138 (0x85a), region = 29  ;;  %1118 = vmatprep.mubr.msk.f32.mxu0 (!%p1043_p0), %vm68_vm2, %v1367_v7  ;;  %1223 = vset.pattern.permute.xlu0 (!%p1043_p0), %v1320_v10  ;;  %v45_v11 = vld [vmem:[%s1584_s4 + $0x8] sm:$0xf] (!%p1043_p0)  ;;  %v44_v13 = vld [vmem:[%s1584_s4] sm:$0xff] (!%p1043_p0)  ;;  %vm1321_vm3 = vmmov (!%p1043_p0), 1  }
   0x4   :  { %v30_v3 = vadd.s32 8, %v29_v2  ;;  %162 = vperm.xlu0 (!%p1043_p0), %1223, %v45_v11   ;;  %1125 = vmatprep.mubr.msk.f32.mxu1 (!%p1043_p0), %vm68_vm2, %v1367_v7  ;;  %vm1384_vm4 = vmpackc.low (!%p1043_p0), %vm53_vm1, %vm1321_vm3  ;;  %v1395_v27 = vld [vmem:[%s1583_s3 + $0x8] sm:$0xf] (!%p1043_p0)  ;;  %v1404_v29 = vld [vmem:[%s1582_s2] sm:$0x1] (!%p1043_p0)  ;;  %v1412_v33 = vsub.s32 (!%p1043_p0), 0, %v29_v2 }
   0x5   :  { %vm173_vm5 = vcmp.gt.s32.totalorder (!%p1043_p0), %v1404_v29, 0  ;;  %v52_v32 = vld [vmem:[%s1581_s1 + $0x8] sm:$0xf] (!%p1043_p0)  ;;  %v51_v34 = vld [vmem:[%s1581_s1] sm:$0xff] (!%p1043_p0)  ;;  %vm287_vm7 = vcmp.gt.s32.totalorder (!%p1043_p0), %v1404_v29, 1  ;;  %vm401_vm9 = vcmp.gt.s32.totalorder (!%p1043_p0), %v1404_v29, 2 }
   0x6   :  { %vm32_vm0 = vcmp.eq.s32.totalorder %v30_v3, 10  ;;  %v174_v35 = vsel (!%p1043_p0), %vm173_vm5, 1, %v1320_v10  ;;  %v1048_v3 = vld [vmem:[%s1581_s1 + $0x18] sm:$0xf] (!%p1043_p0)  ;;  %vm515_vm11 = vcmp.gt.s32.totalorder (!%p1043_p0), %v1404_v29, 3  ;;  %vm629_vm13 = vcmp.gt.s32.totalorder (!%p1043_p0), %v1404_v29, 4 }
   0x7   :  { %v34_v4 = vsel %vm32_vm0, 0.0, %v1319_v1  ;;  %v178_v38 = vrot.slane (!%p1043_p0), %v174_v35, %v1412_v33  ;;  %vm743_vm15 = vcmp.gt.s32.totalorder (!%p1043_p0), %v1404_v29, 5  ;;  %vm857_vm3 = vcmp.gt.s32.totalorder (!%p1043_p0), %v1404_v29, 6 }
   0x8   :  { %36 = vst [vmem:[#allocation2 + $0x8] sm:$0xf] %v34_v4  ;;  %v1362_v5 = vld [vmem:[#allocation2] sm:$0xff] (!%p1043_p0)  ;;  %157 = vperm.xlu0 (!%p1043_p0), %1223, %v44_v13   ;;  %v288_v4 = vsel (!%p1043_p0), %vm287_vm7, 1, %v1320_v10 }
   0x9   :  { %vm179_vm6 = vcmp.eq.s32.totalorder (!%p1043_p0), %v178_v38, 1 }
   0xf   :  { %v50_v6 = vld [vmem:[#allocation2 + $0x8] sm:$0xf] }
  0x10   :  { %v54_v8 = vsel %vm53_vm1, %v50_v6, -inf }
  0x11   :  { %v55_v9 = vmax.f32 %v1362_v5, %v54_v8  ;;  %v292_v8 = vrot.slane %v288_v4, %v1412_v33 }
  0x13   :  { %v56_v12 = vrot.slane %v55_v9, 4  ;;  %vm293_vm8 = vcmp.eq.s32.totalorder %v292_v8, 1 }
  0x15   :  { %v57_v14 = vmax.f32 %v55_v9, %v56_v12 }
  0x17   :  { %v58_v15 = vrot.slane %v57_v14, 2 }
  0x19   :  { %v59_v16 = vmax.f32 %v57_v14, %v58_v15 }
  0x1b   :  { %v60_v17 = vrot.slane %v59_v16, 1 }
  0x1d   :  { %v61_v18 = vmax.f32 %v59_v16, %v60_v17 }
  0x1f   :  { %v62_v19 = vsub.f32 %v1362_v5, %v61_v18  ;;  %v63_v20 = vsub.f32 %v50_v6, %v61_v18  ;;  %v154_v36 = vadd.f32 %v61_v18, %v52_v32  ;;  %v153_v37 = vadd.f32 %v61_v18, %v51_v34 }
  0x21   :  { %v64_v21 = vmul.f32 1.442695, %v62_v19  ;;  %v66_v22 = vmul.f32 1.442695, %v63_v20 }
  0x23   :  { %1224 = vpow2.f32 %v64_v21 }
  0x24   :  { %1226 = vpow2.f32 %v66_v22 }
  0x2d   :  { %v1225_v23 = vpop.eup %1224 }
  0x2e   :  { %v1227_v24 = vpop.eup %1226 }
  0x2f   :  { %v1170_v26 = vpack.c.bf16 %v1227_v24, %v1225_v23 }
  0x31   :  { %1172 = vmatprep.subr.msk.bf16.mxu0 %vm1384_vm4, %v1170_v26 }
  0x32   :  { %1175 = vmatpush3.bf16.msk.msra.mxu0 %vm1384_vm4, %v1170_v26 }
  0x35   :  { %1119 = vmatmul.mubr.msk.f32.vlgmr.msra.gmra.mrb[0].mxu0 %vm68_vm2, %v1395_v27 }
  0x36   :  { %1132 = vmatprep.mubr.msk.f32.mxu0 %vm68_vm2, %v1367_v7 }
  0x83   :  { %v1407_v31 = vpop.permute.xlu0 %162 }
  0x84   :  { %v166_v43 = vadd.f32 %v1407_v31, %v154_v36 }
  0x87   :  { %v1419_v39 = vpop.permute.xlu0 %157 }
  0x88   :  { %v165_v45 = vadd.f32 %v1419_v39, %v153_v37 }
 0x108   :  { %v1120_v28 = vpop.f32.mrb[0].mxu0 }
 0x109   :  { %1228 = vlog2.f32 %v1120_v28  ;;  %v144_v30 = vpop.f32.mrb[1].mxu0 }
 0x10a   :  { %1230 = vlog2.f32 %v144_v30 }
 0x113   :  { %v1229_v40 = vpop.eup %1228 }
 0x114   :  { %v1231_v41 = vpop.eup %1230  ;;  %v170_v42 = vmul.f32 0.6931472, %v1229_v40 }
 0x115   :  { %v168_v44 = vmul.f32 0.6931472, %v1231_v41 }
 0x116   :  { %v172_v46 = vadd.f32 %v170_v42, %v166_v43 }
 0x117   :  { %v171_v47 = vadd.f32 %v168_v44, %v165_v45  ;;  %v1053_v44 = vld [vmem:[%s1581_s1 + $0x28] sm:$0xf]  ;;  %v402_v45 = vsel %vm401_vm9, 1, %v1320_v10 }
 0x118   :  { %v181_v48 = vsel %vm179_vm6, %v172_v46, %v50_v6  ;;  %v1052_v46 = vld [vmem:[%s1581_s1 + $0x20] sm:$0xff] }
 0x119   :  { %v180_v49 = vsel %vm179_vm6, %v171_v47, %v1362_v5  ;;  %v185_v50 = vsel %vm53_vm1, %v181_v48, -inf  ;;  %v1047_v5 = vld [vmem:[%s1581_s1 + $0x10] sm:$0xff] }
 0x11a   :  { %v186_v51 = vmax.f32 %v180_v49, %v185_v50 }
 0x11c   :  { %v187_v52 = vrot.slane %v186_v51, 4 }
 0x11e   :  { %v188_v53 = vmax.f32 %v186_v51, %v187_v52 }
 0x120   :  { %v189_v54 = vrot.slane %v188_v53, 2 }
 0x122   :  { %v190_v55 = vmax.f32 %v188_v53, %v189_v54 }
 0x124   :  { %v191_v56 = vrot.slane %v190_v55, 1 }
 0x126   :  { %v192_v57 = vmax.f32 %v190_v55, %v191_v56 }
 0x128   :  { %v193_v58 = vsub.f32 %v180_v49, %v192_v57  ;;  %v194_v59 = vsub.f32 %v181_v48, %v192_v57  ;;  %v278_v6 = vadd.f32 %v1048_v3, %v192_v57  ;;  %v277_v9 = vadd.f32 %v1047_v5, %v192_v57 }
 0x12a   :  { %v195_v60 = vmul.f32 1.442695, %v193_v58  ;;  %v197_v61 = vmul.f32 1.442695, %v194_v59  ;;  %v280_v13 = vadd.f32 %v278_v6, %v1407_v31  ;;  %v279_v15 = vadd.f32 %v277_v9, %v1419_v39 }
 0x12c   :  { %1232 = vpow2.f32 %v195_v60 }
 0x12d   :  { %1234 = vpow2.f32 %v197_v61 }
 0x136   :  { %v1233_v62 = vpop.eup %1232 }
 0x137   :  { %v1235_v63 = vpop.eup %1234 }
 0x138   :  { %v1176_v0 = vpack.c.bf16 %v1235_v63, %v1233_v62 }
 0x13a   :  { %1178 = vmatprep.subr.msk.bf16.mxu1 %vm1384_vm4, %v1176_v0 }
 0x13b   :  { %1181 = vmatpush3.bf16.msk.msra.mxu1 %vm1384_vm4, %v1176_v0 }
 0x13e   :  { %1126 = vmatmul.mubr.msk.f32.vlgmr.msra.gmra.mrb[0].mxu1 %vm68_vm2, %v1395_v27 }
 0x13f   :  { %1139 = vmatprep.mubr.msk.f32.mxu1 %vm68_vm2, %v1367_v7 }
 0x211   :  { %v1127_v1 = vpop.f32.mrb[0].mxu1 }
 0x212   :  { %1236 = vlog2.f32 %v1127_v1  ;;  %v268_v2 = vpop.f32.mrb[1].mxu1 }
 0x213   :  { %1238 = vlog2.f32 %v268_v2 }
 0x21c   :  { %v1237_v11 = vpop.eup %1236 }
 0x21d   :  { %v1239_v12 = vpop.eup %1238  ;;  %v284_v14 = vmul.f32 0.6931472, %v1237_v11 }
 0x21e   :  { %v282_v16 = vmul.f32 0.6931472, %v1239_v12 }
 0x21f   :  { %v286_v17 = vadd.f32 %v284_v14, %v280_v13 }
 0x220   :  { %v285_v18 = vadd.f32 %v282_v16, %v279_v15  ;;  %v1058_v15 = vld [vmem:[%s1581_s1 + $0x38] sm:$0xf]  ;;  %v516_v16 = vsel %vm515_vm11, 1, %v1320_v10 }
 0x221   :  { %v295_v19 = vsel %vm293_vm8, %v286_v17, %v181_v48  ;;  %v406_v48 = vrot.slane %v402_v45, %v1412_v33  ;;  %v1057_v17 = vld [vmem:[%s1581_s1 + $0x30] sm:$0xff] }
 0x222   :  { %v299_v20 = vsel %vm53_vm1, %v295_v19, -inf  ;;  %v294_v21 = vsel %vm293_vm8, %v285_v18, %v180_v49 }
 0x223   :  { %v300_v22 = vmax.f32 %v294_v21, %v299_v20  ;;  %vm407_vm10 = vcmp.eq.s32.totalorder %v406_v48, 1 }
 0x225   :  { %v301_v23 = vrot.slane %v300_v22, 4 }
 0x227   :  { %v302_v24 = vmax.f32 %v300_v22, %v301_v23 }
 0x229   :  { %v303_v26 = vrot.slane %v302_v24, 2 }
 0x22b   :  { %v304_v28 = vmax.f32 %v302_v24, %v303_v26 }
 0x22d   :  { %v305_v30 = vrot.slane %v304_v28, 1 }
 0x22f   :  { %v306_v32 = vmax.f32 %v304_v28, %v305_v30 }
 0x231   :  { %v307_v34 = vsub.f32 %v294_v21, %v306_v32  ;;  %v308_v35 = vsub.f32 %v295_v19, %v306_v32  ;;  %v392_v47 = vadd.f32 %v1053_v44, %v306_v32  ;;  %v391_v49 = vadd.f32 %v1052_v46, %v306_v32 }
 0x233   :  { %v309_v36 = vmul.f32 1.442695, %v307_v34  ;;  %v311_v37 = vmul.f32 1.442695, %v308_v35  ;;  %v394_v52 = vadd.f32 %v392_v47, %v1407_v31  ;;  %v393_v54 = vadd.f32 %v391_v49, %v1419_v39 }
 0x235   :  { %1240 = vpow2.f32 %v309_v36 }
 0x236   :  { %1242 = vpow2.f32 %v311_v37 }
 0x23f   :  { %v1241_v38 = vpop.eup %1240 }
 0x240   :  { %v1243_v40 = vpop.eup %1242 }
 0x241   :  { %v1182_v41 = vpack.c.bf16 %v1243_v40, %v1241_v38 }
 0x243   :  { %1184 = vmatprep.subr.msk.bf16.mxu0 %vm1384_vm4, %v1182_v41 }
 0x244   :  { %1187 = vmatpush3.bf16.msk.msra.mxu0 %vm1384_vm4, %v1182_v41 }
 0x247   :  { %1133 = vmatmul.mubr.msk.f32.vlgmr.msra.gmra.mrb[2].mxu0 %vm68_vm2, %v1395_v27 }
 0x248   :  { %1146 = vmatprep.mubr.msk.f32.mxu0 %vm68_vm2, %v1367_v7 }
 0x31a   :  { %v1134_v42 = vpop.f32.mrb[2].mxu0 }
 0x31b   :  { %1244 = vlog2.f32 %v1134_v42  ;;  %v382_v43 = vpop.f32.mrb[3].mxu0 }
 0x31c   :  { %1246 = vlog2.f32 %v382_v43 }
 0x325   :  { %v1245_v50 = vpop.eup %1244 }
 0x326   :  { %v1247_v51 = vpop.eup %1246  ;;  %v398_v53 = vmul.f32 0.6931472, %v1245_v50 }
 0x327   :  { %v396_v55 = vmul.f32 0.6931472, %v1247_v51 }
 0x328   :  { %v400_v56 = vadd.f32 %v398_v53, %v394_v52 }
 0x329   :  { %v399_v57 = vadd.f32 %v396_v55, %v393_v54  ;;  %v1063_v54 = vld [vmem:[%s1581_s1 + $0x48] sm:$0xf]  ;;  %v630_v55 = vsel %vm629_vm13, 1, %v1320_v10 }
 0x32a   :  { %v409_v58 = vsel %vm407_vm10, %v400_v56, %v295_v19  ;;  %v520_v19 = vrot.slane %v516_v16, %v1412_v33  ;;  %v1062_v56 = vld [vmem:[%s1581_s1 + $0x40] sm:$0xff] }
 0x32b   :  { %v413_v59 = vsel %vm53_vm1, %v409_v58, -inf  ;;  %v408_v60 = vsel %vm407_vm10, %v399_v57, %v294_v21 }
 0x32c   :  { %v414_v61 = vmax.f32 %v408_v60, %v413_v59  ;;  %vm521_vm12 = vcmp.eq.s32.totalorder %v520_v19, 1 }
 0x32e   :  { %v415_v62 = vrot.slane %v414_v61, 4 }
 0x330   :  { %v416_v63 = vmax.f32 %v414_v61, %v415_v62 }
 0x332   :  { %v417_v0 = vrot.slane %v416_v63, 2 }
 0x334   :  { %v418_v1 = vmax.f32 %v416_v63, %v417_v0 }
 0x336   :  { %v419_v2 = vrot.slane %v418_v1, 1 }
 0x338   :  { %v420_v3 = vmax.f32 %v418_v1, %v419_v2 }
 0x33a   :  { %v421_v4 = vsub.f32 %v408_v60, %v420_v3  ;;  %v422_v5 = vsub.f32 %v409_v58, %v420_v3  ;;  %v506_v18 = vadd.f32 %v1058_v15, %v420_v3  ;;  %v505_v20 = vadd.f32 %v1057_v17, %v420_v3 }
 0x33c   :  { %v423_v6 = vmul.f32 1.442695, %v421_v4  ;;  %v425_v8 = vmul.f32 1.442695, %v422_v5  ;;  %v508_v23 = vadd.f32 %v506_v18, %v1407_v31  ;;  %v507_v26 = vadd.f32 %v505_v20, %v1419_v39 }
 0x33e   :  { %1248 = vpow2.f32 %v423_v6 }
 0x33f   :  { %1250 = vpow2.f32 %v425_v8 }
 0x348   :  { %v1249_v9 = vpop.eup %1248 }
 0x349   :  { %v1251_v11 = vpop.eup %1250 }
 0x34a   :  { %v1188_v12 = vpack.c.bf16 %v1251_v11, %v1249_v9 }
 0x34c   :  { %1190 = vmatprep.subr.msk.bf16.mxu1 %vm1384_vm4, %v1188_v12 }
 0x34d   :  { %1193 = vmatpush3.bf16.msk.msra.mxu1 %vm1384_vm4, %v1188_v12 }
 0x350   :  { %1140 = vmatmul.mubr.msk.f32.vlgmr.msra.gmra.mrb[2].mxu1 %vm68_vm2, %v1395_v27 }
 0x351   :  { %1153 = vmatprep.mubr.msk.f32.mxu1 %vm68_vm2, %v1367_v7 }
 0x423   :  { %v1141_v13 = vpop.f32.mrb[2].mxu1 }
 0x424   :  { %1252 = vlog2.f32 %v1141_v13  ;;  %v496_v14 = vpop.f32.mrb[3].mxu1 }
 0x425   :  { %1254 = vlog2.f32 %v496_v14 }
 0x42e   :  { %v1253_v21 = vpop.eup %1252 }
 0x42f   :  { %v1255_v22 = vpop.eup %1254  ;;  %v512_v24 = vmul.f32 0.6931472, %v1253_v21 }
 0x430   :  { %v510_v28 = vmul.f32 0.6931472, %v1255_v22 }
 0x431   :  { %v514_v30 = vadd.f32 %v512_v24, %v508_v23 }
 0x432   :  { %v513_v32 = vadd.f32 %v510_v28, %v507_v26  ;;  %v1068_v26 = vld [vmem:[%s1581_s1 + $0x58] sm:$0xf]  ;;  %v744_v28 = vsel %vm743_vm15, 1, %v1320_v10 }
 0x433   :  { %v523_v34 = vsel %vm521_vm12, %v514_v30, %v409_v58  ;;  %v634_v58 = vrot.slane %v630_v55, %v1412_v33  ;;  %v1067_v30 = vld [vmem:[%s1581_s1 + $0x50] sm:$0xff] }
 0x434   :  { %v527_v35 = vsel %vm53_vm1, %v523_v34, -inf  ;;  %v522_v36 = vsel %vm521_vm12, %v513_v32, %v408_v60 }
 0x435   :  { %v528_v37 = vmax.f32 %v522_v36, %v527_v35  ;;  %vm635_vm14 = vcmp.eq.s32.totalorder %v634_v58, 1 }
 0x437   :  { %v529_v38 = vrot.slane %v528_v37, 4 }
 0x439   :  { %v530_v40 = vmax.f32 %v528_v37, %v529_v38 }
 0x43b   :  { %v531_v41 = vrot.slane %v530_v40, 2 }
 0x43d   :  { %v532_v42 = vmax.f32 %v530_v40, %v531_v41 }
 0x43f   :  { %v533_v43 = vrot.slane %v532_v42, 1 }
 0x441   :  { %v534_v44 = vmax.f32 %v532_v42, %v533_v43 }
 0x443   :  { %v535_v45 = vsub.f32 %v522_v36, %v534_v44  ;;  %v536_v46 = vsub.f32 %v523_v34, %v534_v44  ;;  %v620_v57 = vadd.f32 %v1063_v54, %v534_v44  ;;  %v619_v59 = vadd.f32 %v1062_v56, %v534_v44 }
 0x445   :  { %v537_v47 = vmul.f32 1.442695, %v535_v45  ;;  %v539_v48 = vmul.f32 1.442695, %v536_v46  ;;  %v622_v62 = vadd.f32 %v620_v57, %v1407_v31  ;;  %v621_v0 = vadd.f32 %v619_v59, %v1419_v39 }
 0x447   :  { %1256 = vpow2.f32 %v537_v47 }
 0x448   :  { %1258 = vpow2.f32 %v539_v48 }
 0x451   :  { %v1257_v49 = vpop.eup %1256 }
 0x452   :  { %v1259_v50 = vpop.eup %1258 }
 0x453   :  { %v1194_v51 = vpack.c.bf16 %v1259_v50, %v1257_v49 }
 0x455   :  { %1196 = vmatprep.subr.msk.bf16.mxu0 %vm1384_vm4, %v1194_v51 }
 0x456   :  { %1199 = vmatpush3.bf16.msk.msra.mxu0 %vm1384_vm4, %v1194_v51 }
 0x459   :  { %1147 = vmatmul.mubr.msk.f32.vlgmr.msra.gmra.mrb[4].mxu0 %vm68_vm2, %v1395_v27 }
 0x45a   :  { %1160 = vmatprep.mubr.msk.f32.mxu0 %vm68_vm2, %v1367_v7 }
 0x52c   :  { %v1148_v52 = vpop.f32.mrb[4].mxu0 }
 0x52d   :  { %1260 = vlog2.f32 %v1148_v52  ;;  %v610_v53 = vpop.f32.mrb[5].mxu0 }
 0x52e   :  { %1262 = vlog2.f32 %v610_v53 }
 0x537   :  { %v1261_v60 = vpop.eup %1260 }
 0x538   :  { %v1263_v61 = vpop.eup %1262  ;;  %v626_v63 = vmul.f32 0.6931472, %v1261_v60 }
 0x539   :  { %v624_v1 = vmul.f32 0.6931472, %v1263_v61 }
 0x53a   :  { %v628_v2 = vadd.f32 %v626_v63, %v622_v62  ;;  %v1073_v63 = vld [vmem:[%s1581_s1 + $0x68] sm:$0xf] }
 0x53b   :  { %v627_v3 = vadd.f32 %v624_v1, %v621_v0  ;;  %v858_v0 = vsel %vm857_vm3, 1, %v1320_v10  ;;  %v1072_v1 = vld [vmem:[%s1581_s1 + $0x60] sm:$0xff] }
 0x53c   :  { %v637_v4 = vsel %vm635_vm14, %v628_v2, %v523_v34  ;;  %v748_v34 = vrot.slane %v744_v28, %v1412_v33 }
 0x53d   :  { %v641_v5 = vsel %vm53_vm1, %v637_v4, -inf  ;;  %v636_v6 = vsel %vm635_vm14, %v627_v3, %v522_v36  ;;  %v862_v3 = vrot.slane %v858_v0, %v1412_v33 }
 0x53e   :  { %v642_v8 = vmax.f32 %v636_v6, %v641_v5  ;;  %vm749_vm0 = vcmp.eq.s32.totalorder %v748_v34, 1 }
 0x53f   :  { %vm863_vm5 = vcmp.eq.s32.totalorder %v862_v3, 1 }
 0x540   :  { %v643_v9 = vrot.slane %v642_v8, 4 }
 0x542   :  { %v644_v11 = vmax.f32 %v642_v8, %v643_v9 }
 0x544   :  { %v645_v12 = vrot.slane %v644_v11, 2 }
 0x546   :  { %v646_v13 = vmax.f32 %v644_v11, %v645_v12 }
 0x548   :  { %v647_v14 = vrot.slane %v646_v13, 1 }
 0x54a   :  { %v648_v15 = vmax.f32 %v646_v13, %v647_v14 }
 0x54c   :  { %v649_v16 = vsub.f32 %v636_v6, %v648_v15  ;;  %v650_v17 = vsub.f32 %v637_v4, %v648_v15  ;;  %v734_v32 = vadd.f32 %v1068_v26, %v648_v15 }
 0x54e   :  { %v651_v18 = vmul.f32 1.442695, %v649_v16  ;;  %v653_v19 = vmul.f32 1.442695, %v650_v17  ;;  %v736_v37 = vadd.f32 %v734_v32, %v1407_v31 }
 0x550   :  { %1264 = vpow2.f32 %v651_v18 }
 0x551   :  { %1266 = vpow2.f32 %v653_v19 }
 0x55a   :  { %v1265_v20 = vpop.eup %1264 }
 0x55b   :  { %v1267_v21 = vpop.eup %1266 }
 0x55c   :  { %v1200_v22 = vpack.c.bf16 %v1267_v21, %v1265_v20 }
 0x55e   :  { %1202 = vmatprep.subr.msk.bf16.mxu1 %vm1384_vm4, %v1200_v22 }
 0x55f   :  { %1205 = vmatpush3.bf16.msk.msra.mxu1 %vm1384_vm4, %v1200_v22 }
 0x562   :  { %1154 = vmatmul.mubr.msk.f32.vlgmr.msra.gmra.mrb[4].mxu1 %vm68_vm2, %v1395_v27 }
 0x563   :  { %1167 = vmatprep.mubr.msk.f32.mxu1 %vm68_vm2, %v1367_v7  ;;  %v733_v7 = vadd.f32 %v1067_v30, %v648_v15 }
 0x565   :  { %v735_v40 = vadd.f32 %v733_v7, %v1419_v39 }
 0x635   :  { %v1155_v23 = vpop.f32.mrb[4].mxu1 }
 0x636   :  { %1268 = vlog2.f32 %v1155_v23  ;;  %v724_v24 = vpop.f32.mrb[5].mxu1 }
 0x637   :  { %1270 = vlog2.f32 %v724_v24 }
 0x640   :  { %v1269_v35 = vpop.eup %1268 }
 0x641   :  { %v1271_v36 = vpop.eup %1270  ;;  %v740_v38 = vmul.f32 0.6931472, %v1269_v35 }
 0x642   :  { %v738_v41 = vmul.f32 0.6931472, %v1271_v36 }
 0x643   :  { %v742_v42 = vadd.f32 %v740_v38, %v736_v37  ;;  %v1078_v38 = vld [vmem:[%s1581_s1 + $0x78] sm:$0xf] }
 0x644   :  { %v741_v43 = vadd.f32 %v738_v41, %v735_v40 }
 0x645   :  { %v751_v44 = vsel %vm749_vm0, %v742_v42, %v637_v4 }
 0x646   :  { %v755_v45 = vsel %vm53_vm1, %v751_v44, -inf  ;;  %v750_v46 = vsel %vm749_vm0, %v741_v43, %v636_v6 }
 0x647   :  { %v756_v47 = vmax.f32 %v750_v46, %v755_v45 }
 0x649   :  { %v757_v48 = vrot.slane %v756_v47, 4 }
 0x64b   :  { %v758_v49 = vmax.f32 %v756_v47, %v757_v48 }
 0x64d   :  { %v759_v50 = vrot.slane %v758_v49, 2 }
 0x64f   :  { %v760_v51 = vmax.f32 %v758_v49, %v759_v50 }
 0x651   :  { %v761_v52 = vrot.slane %v760_v51, 1 }
 0x653   :  { %v762_v53 = vmax.f32 %v760_v51, %v761_v52 }
 0x655   :  { %v763_v54 = vsub.f32 %v750_v46, %v762_v53  ;;  %v764_v55 = vsub.f32 %v751_v44, %v762_v53  ;;  %v848_v2 = vadd.f32 %v1073_v63, %v762_v53  ;;  %v847_v4 = vadd.f32 %v1072_v1, %v762_v53 }
 0x657   :  { %v765_v56 = vmul.f32 1.442695, %v763_v54  ;;  %v767_v57 = vmul.f32 1.442695, %v764_v55  ;;  %v850_v8 = vadd.f32 %v848_v2, %v1407_v31  ;;  %v849_v11 = vadd.f32 %v847_v4, %v1419_v39 }
 0x659   :  { %1272 = vpow2.f32 %v765_v56 }
 0x65a   :  { %1274 = vpow2.f32 %v767_v57 }
 0x663   :  { %v1273_v58 = vpop.eup %1272 }
 0x664   :  { %v1275_v59 = vpop.eup %1274 }
 0x665   :  { %v1206_v60 = vpack.c.bf16 %v1275_v59, %v1273_v58 }
 0x667   :  { %1208 = vmatprep.subr.msk.bf16.mxu0 %vm1384_vm4, %v1206_v60 }
 0x668   :  { %1211 = vmatpush3.bf16.msk.msra.mxu0 %vm1384_vm4, %v1206_v60 }
 0x66b   :  { %1161 = vmatmul.mubr.msk.f32.vlgmr.msra.gmra.mrb[6].mxu0 %vm68_vm2, %v1395_v27 }
 0x73e   :  { %v1162_v61 = vpop.f32.mrb[6].mxu0 }
 0x73f   :  { %1276 = vlog2.f32 %v1162_v61  ;;  %v838_v62 = vpop.f32.mrb[7].mxu0 }
 0x740   :  { %1278 = vlog2.f32 %v838_v62 }
 0x749   :  { %v1277_v5 = vpop.eup %1276 }
 0x74a   :  { %v1279_v6 = vpop.eup %1278  ;;  %v854_v9 = vmul.f32 0.6931472, %v1277_v5 }
 0x74b   :  { %v852_v12 = vmul.f32 0.6931472, %v1279_v6 }
 0x74c   :  { %v856_v13 = vadd.f32 %v854_v9, %v850_v8 }
 0x74d   :  { %v855_v14 = vadd.f32 %v852_v12, %v849_v11 }
 0x74e   :  { %v865_v15 = vsel %vm863_vm5, %v856_v13, %v751_v44 }
 0x74f   :  { %v869_v16 = vsel %vm53_vm1, %v865_v15, -inf  ;;  %v864_v17 = vsel %vm863_vm5, %v855_v14, %v750_v46  ;;  %vm971_vm1 = vcmp.gt.s32.totalorder %v1404_v29, 7 }
 0x750   :  { %v870_v18 = vmax.f32 %v864_v17, %v869_v16  ;;  %v972_v40 = vsel %vm971_vm1, 1, %v1320_v10 }
 0x751   :  { %v976_v42 = vrot.slane %v972_v40, %v1412_v33 }
 0x752   :  { %v871_v19 = vrot.slane %v870_v18, 4 }
 0x754   :  { %v872_v20 = vmax.f32 %v870_v18, %v871_v19 }
 0x756   :  { %v873_v21 = vrot.slane %v872_v20, 2 }
 0x758   :  { %v874_v22 = vmax.f32 %v872_v20, %v873_v21 }
 0x75a   :  { %v875_v23 = vrot.slane %v874_v22, 1 }
 0x75c   :  { %v876_v24 = vmax.f32 %v874_v22, %v875_v23 }
 0x75e   :  { %v877_v26 = vsub.f32 %v864_v17, %v876_v24  ;;  %v878_v28 = vsub.f32 %v865_v15, %v876_v24  ;;  %v962_v41 = vadd.f32 %v1078_v38, %v876_v24 }
 0x760   :  { %v879_v30 = vmul.f32 1.442695, %v877_v26  ;;  %v881_v32 = vmul.f32 1.442695, %v878_v28  ;;  %v964_v45 = vadd.f32 %v962_v41, %v1407_v31 }
 0x762   :  { %1280 = vpow2.f32 %v879_v30 }
 0x763   :  { %1282 = vpow2.f32 %v881_v32 }
 0x76c   :  { %v1281_v34 = vpop.eup %1280 }
 0x76d   :  { %v1283_v7 = vpop.eup %1282 }
 0x76e   :  { %v1212_v35 = vpack.c.bf16 %v1283_v7, %v1281_v34 }
 0x770   :  { %1214 = vmatprep.subr.msk.bf16.mxu1 %vm1384_vm4, %v1212_v35 }
 0x771   :  { %1217 = vmatpush3.bf16.msk.msra.mxu1 %vm1384_vm4, %v1212_v35 }
 0x774   :  { %1168 = vmatmul.mubr.msk.f32.vlgmr.msra.gmra.mrb[6].mxu1 %vm68_vm2, %v1395_v27  ;;  %v961_v27 = vadd.f32 %v1077_v25, %v876_v24  ;;  %vm977_vm2 = vcmp.eq.s32.totalorder %v976_v42, 1 }
 0x776   :  { %v963_v29 = vadd.f32 %v961_v27, %v1419_v39 }
 0x847   :  { %v1169_v36 = vpop.f32.mrb[6].mxu1 }
 0x848   :  { %1284 = vlog2.f32 %v1169_v36  ;;  %v952_v37 = vpop.f32.mrb[7].mxu1 }
 0x849   :  { %1286 = vlog2.f32 %v952_v37 }
 0x852   :  { %v1285_v43 = vpop.eup %1284 }
 0x853   :  { %v1287_v44 = vpop.eup %1286  ;;  %v968_v46 = vmul.f32 0.6931472, %v1285_v43 }
 0x854   :  { %v966_v47 = vmul.f32 0.6931472, %v1287_v44 }
 0x855   :  { %v970_v48 = vadd.f32 %v968_v46, %v964_v45 }
 0x856   :  { %v969_v49 = vadd.f32 %v966_v47, %v963_v29 }
 0x857   :  { %v979_v10 = vsel %vm977_vm2, %v970_v48, %v865_v15 }
 0x858   :  { %981 = vst [vmem:[#allocation2 + $0x8] sm:$0xf] %v979_v10  ;;  %v978_v50 = vsel %vm977_vm2, %v969_v49, %v864_v17 }
 0x859   :  { %980 = vst [vmem:[#allocation2] sm:$0xff] %v978_v50 }
 0x85a PF:  { %v988_v33 = vld [vmem:[%s1585_s5 + $0x8] sm:$0xf]  ;;  %v1322_v51 = vmov 0   ;;  %v987_v31 = vld [vmem:[%s1585_s5] sm:$0xff]  ;;  %vm1001_vm4 = vcmask 1043456   ;;  %s1323_s5 = smov [#allocation5]  }
 0x85b   :  { %1288 = vset.pattern.permute.xlu0 %v1322_v51  ;;  %s1034_s12 = sshll.u32 %s1323_s5, 4  ;;  %s1035_s12 = int_to_ptr.vmem [resolvable:$true] %s1034_s12 }
 0x85c   :  { %996 = vperm.xlu0 %1288, %v988_v33   ;;  %s1295_s13 = scalar_lea.vmem %s1035_s12, 16  ;;  %s1299_s14 = scalar_lea.vmem %s1035_s12, 32 }
 0x85d   :  { %p1296_p1 = scmp.ne.s32.totalorder %s1035_s12, %s1295_s13  ;;  %p1300_p2 = scmp.lt.s32.totalorder %s1035_s12, %s1035_s12 }
 0x85e   :  { %p1301_p3 = scmp.lt.s32.totalorder %s1299_s14, %s1295_s13 }
 0x85f   :  { %v986_v39 = vld [vmem:[#allocation2 + $0x8] sm:$0xf] }
 0x860   :  { %991 = vperm.xlu0 %1288, %v987_v31   ;;  %v985_v54 = vld [vmem:[#allocation2] sm:$0xff]  ;;  %p1302_p4 = por %p1301_p3, %p1300_p2 }
 0x862   :  { %p1303_p5 = pnand %p1302_p4, %p1296_p1 }
 0x8db   :  { %v997_v52 = vpop.permute.xlu0 %996 }
 0x8dc   :  { %v1000_v53 = vadd.f32 %v997_v52, %v986_v39 }
 0x8de   :  { %v1002_v57 = vsel %vm1001_vm4, %v1000_v53, -inf }
 0x8df   :  { %v992_v55 = vpop.permute.xlu0 %991 }
 0x8e0   :  { %v999_v56 = vadd.f32 %v992_v55, %v985_v54 }
 0x8e2   :  { %v1003_v58 = vmax.f32 %v999_v56, %v1002_v57 }
 0x8e4   :  { %v1004_v59 = vrot.slane %v1003_v58, 4 }
 0x8e6   :  { %v1005_v60 = vmax.f32 %v1003_v58, %v1004_v59 }
 0x8e8   :  { %v1006_v61 = vrot.slane %v1005_v60, 2 }
 0x8ea   :  { %v1007_v62 = vmax.f32 %v1005_v60, %v1006_v61 }
 0x8ec   :  { %v1008_v63 = vrot.slane %v1007_v62, 1 }
 0x8ee   :  { %v1009_v0 = vmax.f32 %v1007_v62, %v1008_v63 }
 0x8f0   :  { %v1010_v1 = vsub.f32 %v999_v56, %v1009_v0  ;;  %v1011_v2 = vsub.f32 %v1000_v53, %v1009_v0 }
 0x8f2   :  { %v1012_v3 = vmul.f32 1.442695, %v1010_v1  ;;  %v1014_v4 = vmul.f32 1.442695, %v1011_v2 }
 0x8f4   :  { %1289 = vpow2.f32 %v1012_v3 }
 0x8f5   :  { %1291 = vpow2.f32 %v1014_v4 }
 0x8fe   :  { %v1290_v5 = vpop.eup %1289 }
 0x8ff   :  { %v1292_v6 = vpop.eup %1291 }
 0x900   :  { %v1016_v8 = vsel %vm1001_vm4, %v1292_v6, 0.0 }
 0x901   :  { %v1017_v9 = vadd.f32 %v1290_v5, %v1016_v8 }
 0x903   :  { %v1018_v11 = vrot.slane %v1017_v9, 4 }
 0x905   :  { %v1019_v12 = vadd.f32 %v1018_v11, %v1017_v9 }
 0x907   :  { %v1020_v13 = vrot.slane %v1019_v12, 2 }
 0x909   :  { %v1021_v14 = vadd.f32 %v1020_v13, %v1019_v12 }
 0x90b   :  { %v1022_v15 = vrot.slane %v1021_v14, 1 }
 0x90d   :  { %v1023_v16 = vadd.f32 %v1022_v15, %v1021_v14 }
 0x90f   :  { %1293 = vlog2.f32 %v1023_v16 }
 0x919   :  { %v1294_v17 = vpop.eup %1293 }
 0x91a   :  { %v1025_v18 = vmul.f32 0.6931472, %v1294_v17 }
 0x91c   :  { %v1026_v19 = vadd.f32 %v1025_v18, %v1009_v0 }
 0x91e   :  { %1027 = vst [vmem:[#allocation5] sm:$0x1] %v1026_v19 }
 0x91f   :  { %1306 = shalt.err (!%p1303_p5)
}
 0x920   :  { %s1307_s17 = scalar_lea.hbm %s1586_s6, 16 }
 0x921   :  { %p1308_p6 = scmp.ne.s32.totalorder %s1586_s6, %s1307_s17  ;;  %p1311_p7 = scmp.lt.u32.totalorder %s1307_s17, %s1586_s6 }
 0x923   :  { %p1313_p8 = pnand %p1311_p7, %p1308_p6 }
 0x925   :  { %1316 = shalt.err (!%p1313_p8)
}
 0x926   :  { %1037 = dma.vmem_to_hbm [thread:$0]  %s1035_s12, 16, %s1586_s6, [#allocation6]  }
 0x927   :  { %1317 = dma.done.wait [#allocation6], 16  }
 0x928   :  { %1318 = vsyncadd [#allocation6], 4294967280 }
 0x929   :  { %1041 = vsyncpa [#allocation6], 1 }

</bundles_post_ra>
